<compile_context>
chip_gen: v5e
topology: v5e:2x2
jax: 0.10.0
libtpu: 0.0.40
codegen_flags: <defaults>
</compile_context>

<pallas_src>
import functools
import math

import jax
import jax.numpy as jnp
from jax import lax
from jax.experimental import pallas as pl
from jax.experimental.pallas import tpu as pltpu

LOG_2PI = math.log(2.0 * math.pi)
# high-concentration approximation of the Bingham normalization constant on S^3:
#   F(L) ~= 2 * pi^{3/2} / sqrt(prod_i(-lambda_i))
LOG_F_CONST = math.log(2.0) + 1.5 * math.log(math.pi)

_OUT_SUBLANES = 8
_OUT_LANES = 128


def _fold_lanes(row):
    """(1, BT) -> (1, 128): pairwise tree-sum of 128-lane chunks (pure VALU,
    lane-aligned static slices, no cross-lane XLU reduce)."""
    bt = row.shape[1]
    chunks = [row[:, m * _OUT_LANES:(m + 1) * _OUT_LANES]
              for m in range(bt // _OUT_LANES)]
    while len(chunks) > 1:
        nxt = [chunks[i] + chunks[i + 1] for i in range(0, len(chunks) - 1, 2)]
        if len(chunks) % 2:
            nxt.append(chunks[-1])
        chunks = nxt
    return chunks[0]


def _rwta_kernel(hyp_ref, gt_ref, out_ref, *, epsilon, num_h, b_true):
    """hyp_ref: [14, H, BT]  (q0..q3, la..lc, x0..x2, v0..v2, w)
       gt_ref : [7, 1, BT]   (t0..t3, g0..g2), broadcast over the H sublanes
       out_ref: [1, 8, 128]  sublane 0/1/2 = bingham / weight-CE / gaussian
                              per-lane partial sums for this batch tile."""
    f32 = jnp.float32
    H = num_h

    def hyp(i):                       # [H, BT]; upcast bf16 -> f32 right away
        return hyp_ref[i].astype(f32)

    def gtc(i):                       # [1, BT]
        return gt_ref[i].astype(f32)

    q0, q1, q2, q3 = hyp(0), hyp(1), hyp(2), hyp(3)
    la, lb, lc = hyp(4), hyp(5), hyp(6)
    x0, x1, x2 = hyp(7), hyp(8), hyp(9)
    v0, v1, v2 = hyp(10), hyp(11), hyp(12)
    w = hyp(13)
    t0, t1, t2, t3 = gtc(0), gtc(1), gtc(2), gtc(3)
    g0, g1, g2 = gtc(4), gtc(5), gtc(6)

    BT = w.shape[1]

    # ------------- L1 hypothesis selection (argmin over H = sublanes) --------
    l1 = (jnp.abs(q0 - t0) + jnp.abs(q1 - t1) + jnp.abs(q2 - t2)
          + jnp.abs(q3 - t3)
          + jnp.abs(x0 - g0) + jnp.abs(x1 - g1) + jnp.abs(x2 - g2))   # [H,BT]
    hiota = lax.broadcasted_iota(jnp.int32, (H, BT), 0)
    minval = jnp.min(l1, axis=0, keepdims=True)                       # [1,BT]
    best_idx = jnp.min(jnp.where(l1 == minval, hiota, H),
                       axis=0, keepdims=True)                         # [1,BT]
    is_best = hiota == best_idx                                       # [H,BT]

    # ------------- Bingham log-likelihood ------------------------------------
    d1 = -q1 * t0 + q0 * t1 + q3 * t2 - q2 * t3
    d2 = -q2 * t0 - q3 * t1 + q0 * t2 + q1 * t3
    d3 = -q3 * t0 + q2 * t1 - q1 * t2 + q0 * t3
    # TODO(synk): torch_bingham.bingham_prob uses a precomputed lookup table for
    # the exact normalization constant F(lambda); closed-form high-concentration
    # approximation used here instead.
    log_f = LOG_F_CONST - 0.5 * jnp.log((-la) * (-lb) * (-lc))   # fused log
    p_b = la * d1 * d1 + lb * d2 * d2 + lc * d3 * d3 - log_f          # [H,BT]

    # ------------- Gaussian log-likelihood -----------------------------------
    vv0, vv1, vv2 = v0 + 1e-8, v1 + 1e-8, v2 + 1e-8
    v01, v02, v12 = vv0 * vv1, vv0 * vv2, vv1 * vv2
    det = v01 * vv2
    inv = pl.reciprocal(det, approx=True)          # EUP seed (off the VALU)
    inv = inv * (2.0 - det * inv)                  # 1 Newton step -> ~f32 exact
    maha = ((g0 - x0) ** 2 * v12 + (g1 - x1) ** 2 * v02
            + (g2 - x2) ** 2 * v01) * inv
    p_g = -0.5 * (maha + 3.0 * LOG_2PI + jnp.log(det))                # [H,BT]

    # ------------- per-lane partial sums (mask padded batch lanes) -----------
    col = lax.broadcasted_iota(jnp.int32, (1, BT), 1) + pl.program_id(0) * BT
    valid = col < b_true                                              # [1,BT]

    h_f = float(H)
    coef_best = epsilon - 1.0 / h_f
    coef_all = (1.0 - epsilon) / (h_f * h_f)   # (1-eps)/H coef and /H of mean

    def mix_row(p):                        # [H,BT] -> per-lane mixture partial
        neg = -p
        sum_all = jnp.sum(neg, axis=0, keepdims=True)                 # [1,BT]
        sum_best = jnp.sum(jnp.where(is_best, neg, 0.0),
                           axis=0, keepdims=True)                     # [1,BT]
        return coef_best * sum_best + coef_all * sum_all              # [1,BT]

    # cross entropy on mixture weights (per-lane partial)
    wmax = jnp.max(w, axis=0, keepdims=True)
    lse = wmax + jnp.log(jnp.sum(jnp.exp(w - wmax), axis=0, keepdims=True))
    sel = jnp.sum(jnp.where(is_best, w, 0.0), axis=0, keepdims=True)

    pb_row = _fold_lanes(jnp.where(valid, mix_row(p_b), 0.0))         # (1,128)
    wl_row = _fold_lanes(jnp.where(valid, lse - sel, 0.0))            # (1,128)
    pg_row = _fold_lanes(jnp.where(valid, mix_row(p_g), 0.0))         # (1,128)

    out_ref[:, 0:1, :] = pb_row[None]
    out_ref[:, 1:2, :] = wl_row[None]
    out_ref[:, 2:3, :] = pg_row[None]
    out_ref[:, 3:, :] = jnp.zeros((1, _OUT_SUBLANES - 3, _OUT_LANES), f32)


def _pick_batch_tile(bp):
    # bp is always a multiple of 128 (wrapper pads), so this always hits.
    # bt=16384 double-buffered is ~15.6 MiB f32 -> fits the 32 MiB scoped
    # VMEM limit on every generation (incl. v7x's 64 MiB physical VMEM).
    for bt in (16384, 8192, 4096, 2048, 1024, 512, 256, 128):
        if bp % bt == 0:
            return bt
    return bp


def _dimension_semantics(nb):
    try:
        kind = jax.devices()[0].device_kind.lower()
    except Exception:  # pragma: no cover
        kind = ""
    if "v7" in kind and nb >= 2 and nb % 2 == 0:
        # v7x has 2 TensorCores/chip; only CORE_PARALLEL actually shards the
        # grid across them ("parallel" alone barely changes codegen).
        return (pltpu.CORE_PARALLEL,)
    return ("parallel",)


def rwta_loss(pred_q, pred_l, weights, gt_q, pred_x, pred_var, gt_t,
              num_h, epsilon=0.95):
    """pred_q:[B,H,4] pred_l:[B,H,3] weights:[B,H] gt_q:[B,4]
       pred_x:[B,H,3] pred_var:[B,H,3] gt_t:[B,3] -> (loss, weight_loss, gloss)"""
    B = weights.shape[0]
    H = num_h
    f32 = jnp.float32

    args = (pred_q, pred_l, weights, gt_q, pred_x, pred_var, gt_t)
    all_bf16 = all(jnp.asarray(a).dtype == jnp.bfloat16 for a in args)
    pack_dt = jnp.bfloat16 if all_bf16 else f32   # bf16 halves HBM reads

    # --- fuse all hypothesis tensors into ONE [B,H,14] slab and both GT
    #     tensors into ONE [B,7] slab -> a single transpose per slab.
    # TODO(synk): if upstream emits [C,H,B] directly, these two transposes
    # (one extra HBM round trip) disappear entirely.
    hyp = jnp.concatenate([
        pred_q.reshape(B, H, 4).astype(pack_dt),
        pred_l.reshape(B, H, 3).astype(pack_dt),
        pred_x.reshape(B, H, 3).astype(pack_dt),
        pred_var.reshape(B, H, 3).astype(pack_dt),
        weights.reshape(B, H, 1).astype(pack_dt),
    ], axis=-1)                                                    # [B,H,14]
    gt = jnp.concatenate([
        gt_q.reshape(B, 4).astype(pack_dt),
        gt_t.reshape(B, 3).astype(pack_dt),
    ], axis=-1)                                                    # [B,7]

    # --- pad batch to a multiple of 128 with finite "safe" values; the padded
    #     lanes are masked out inside the kernel.
    bp = ((B + _OUT_LANES - 1) // _OUT_LANES) * _OUT_LANES
    pad = bp - B
    if pad:
        safe = jnp.array([0, 0, 0, 0,        # quaternion
                          -1, -1, -1,        # bingham lambdas (logs stay finite)
                          0, 0, 0,           # translation
                          1, 1, 1,           # variance (positive)
                          0],                # mixture weight
                         pack_dt)
        hyp = jnp.concatenate([hyp, jnp.broadcast_to(safe, (pad, H, 14))], 0)
        gt = jnp.concatenate([gt, jnp.zeros((pad, 7), pack_dt)], 0)

    hyp_chb = jnp.transpose(hyp, (2, 1, 0))                        # [14,H,Bp]
    gt_chb = jnp.transpose(gt, (1, 0)).reshape(7, 1, bp)           # [7,1,Bp]

    bt = _pick_batch_tile(bp)
    nb = bp // bt

    kernel = functools.partial(_rwta_kernel, epsilon=float(epsilon),
                               num_h=H, b_true=B)
    grid_spec = pltpu.PrefetchScalarGridSpec(
        num_scalar_prefetch=0,
        grid=(nb,),
        in_specs=[
            pl.BlockSpec((14, H, bt), lambda i: (0, 0, i)),   # hypothesis slab
            pl.BlockSpec((7, 1, bt), lambda i: (0, 0, i)),    # ground-truth slab
        ],
        out_specs=pl.BlockSpec((1, _OUT_SUBLANES, _OUT_LANES),
                               lambda i: (i, 0, 0)),
    )
    itemsize = jnp.dtype(pack_dt).itemsize
    cost = pl.CostEstimate(
        flops=int(110 * H * bp),
        transcendentals=int((4 * H + 1) * bp),
        bytes_accessed=int((14 * H + 7) * bp * itemsize
                           + nb * _OUT_SUBLANES * _OUT_LANES * 4),
    )
    partials = pl.pallas_call(
        kernel,
        out_shape=jax.ShapeDtypeStruct((nb, _OUT_SUBLANES, _OUT_LANES), f32),
        grid_spec=grid_spec,
        compiler_params=pltpu.CompilerParams(
            dimension_semantics=_dimension_semantics(nb),
            vmem_limit_bytes=32 * 1024 * 1024),
        cost_estimate=cost,
    )(hyp_chb, gt_chb)

    # sublanes 0/1/2 hold 128 per-lane partial accumulators each; finish the
    # tiny cross-lane / cross-tile reduction and 1/B scaling in plain JAX.
    totals = jnp.sum(partials[:, :3, :], axis=(0, 2)) / float(B)
    return totals[0], totals[1], totals[2]


def _reference(pred_q, pred_l, weights, gt_q, pred_x, pred_var, gt_t,
               num_h, epsilon=0.95):
    """Pure-JAX mirror of the PyTorch forward (same Bingham normalization approx)."""
    B, H = weights.shape
    q = pred_q.reshape(-1, 4)
    t = jnp.broadcast_to(gt_q.reshape(B, 1, 4), (B, H, 4)).reshape(-1, 4)
    x = pred_x.reshape(-1, 3)
    g = jnp.broadcast_to(gt_t.reshape(B, 1, 3), (B, H, 3)).reshape(-1, 3)
    var = pred_var.reshape(-1, 3) + 1e-8
    lam = pred_l.reshape(-1, 3)

    l1 = jnp.abs(q - t).sum(-1).reshape(B, H) + jnp.abs(x - g).sum(-1).reshape(B, H)
    best = jnp.argmin(l1, axis=1)

    d1 = -q[:, 1] * t[:, 0] + q[:, 0] * t[:, 1] + q[:, 3] * t[:, 2] - q[:, 2] * t[:, 3]
    d2 = -q[:, 2] * t[:, 0] - q[:, 3] * t[:, 1] + q[:, 0] * t[:, 2] + q[:, 1] * t[:, 3]
    d3 = -q[:, 3] * t[:, 0] + q[:, 2] * t[:, 1] - q[:, 1] * t[:, 2] + q[:, 0] * t[:, 3]
    log_f = LOG_F_CONST - 0.5 * jnp.sum(jnp.log(-lam), axis=1)
    pb = (lam[:, 0] * d1 ** 2 + lam[:, 1] * d2 ** 2 + lam[:, 2] * d3 ** 2 - log_f
          ).reshape(B, H)

    maha = jnp.sum((g - x) ** 2 / var, axis=1)
    pg = (-0.5 * (maha + 3.0 * LOG_2PI
                  + jnp.log(var[:, 0] * var[:, 1] * var[:, 2]))).reshape(B, H)

    def mix(p):
        all_a = jnp.mean(-p)
        best_a = jnp.mean(-p[jnp.arange(B), best])
        return (epsilon - 1.0 / H) * best_a + (1.0 - epsilon) / H * all_a

    wl = jnp.mean(jax.nn.logsumexp(weights, axis=1)
                  - weights[jnp.arange(B), best])
    return mix(pb), wl, mix(pg)


if __name__ == "__main__":
    H = 8
    # B=2: tiny, single padded tile.  B=300: exercises batch padding/masking
    # and a multi-step (nb=3) pipelined grid.
    for B in (2, 300):
        key = jax.random.PRNGKey(0)
        ks = jax.random.split(key, 7)

        pred_q = jax.random.normal(ks[0], (B, H, 4), jnp.float32)
        pred_q = pred_q / jnp.linalg.norm(pred_q, axis=-1, keepdims=True)
        pred_l = -(1.0 + 20.0 * jax.random.uniform(ks[1], (B, H, 3), jnp.float32))
        weights = jax.random.normal(ks[2], (B, H), jnp.float32)
        gt_q = jax.random.normal(ks[3], (B, 4), jnp.float32)
        gt_q = gt_q / jnp.linalg.norm(gt_q, axis=-1, keepdims=True)
        pred_x = jax.random.normal(ks[4], (B, H, 3), jnp.float32)
        pred_var = 0.1 + jax.random.uniform(ks[5], (B, H, 3), jnp.float32)
        gt_t = jax.random.normal(ks[6], (B, 3), jnp.float32)

        outs = rwta_loss(pred_q, pred_l, weights, gt_q, pred_x, pred_var,
                         gt_t, num_h=H)
        jax.block_until_ready(outs)

        refs = _reference(pred_q, pred_l, weights, gt_q, pred_x, pred_var,
                          gt_t, num_h=H)
        for name, o, r in zip(("loss", "weight_loss", "gloss"), outs, refs):
            assert jnp.allclose(o, r, rtol=1e-3, atol=1e-3), (B, name, o, r)

    print("KERNEL_OK")
</pallas_src>

<mosaic_0001>
module attributes {stable_mosaic.version = 11 : i64} {
  func.func @_rwta_kernel(%arg0: i32, %arg1: memref<14x8x128xf32, #tpu.memory_space<vmem>>, %arg2: memref<7x1x128xf32, #tpu.memory_space<vmem>>, %arg3: memref<1x8x128xf32, #tpu.memory_space<vmem>>) attributes {dimension_semantics = [#tpu.dimension_semantics<parallel>], iteration_bounds = array<i64: 1>, scalar_prefetch = 0 : i64, scratch_operands = 0 : i64, tpu.core_type = #tpu.core_type<tc>, window_params = [{transform_indices = @transform_0, window_bounds = array<i64: 14, 8, 128>}, {transform_indices = @transform_1, window_bounds = array<i64: 7, 1, 128>}, {transform_indices = @transform_2, window_bounds = array<i64: 1, 8, 128>}]} {
    %c0 = arith.constant 0 : index
    %c0_0 = arith.constant 0 : index
    %c0_1 = arith.constant 0 : index
    %0 = vector.load %arg1[%c0, %c0_0, %c0_1] : memref<14x8x128xf32, #tpu.memory_space<vmem>>, vector<1x8x128xf32>
    %1 = vector.shape_cast %0 : vector<1x8x128xf32> to vector<8x128xf32>
    %c1 = arith.constant 1 : index
    %c0_2 = arith.constant 0 : index
    %c0_3 = arith.constant 0 : index
    %2 = vector.load %arg1[%c1, %c0_2, %c0_3] : memref<14x8x128xf32, #tpu.memory_space<vmem>>, vector<1x8x128xf32>
    %3 = vector.shape_cast %2 : vector<1x8x128xf32> to vector<8x128xf32>
    %c2 = arith.constant 2 : index
    %c0_4 = arith.constant 0 : index
    %c0_5 = arith.constant 0 : index
    %4 = vector.load %arg1[%c2, %c0_4, %c0_5] : memref<14x8x128xf32, #tpu.memory_space<vmem>>, vector<1x8x128xf32>
    %5 = vector.shape_cast %4 : vector<1x8x128xf32> to vector<8x128xf32>
    %c3 = arith.constant 3 : index
    %c0_6 = arith.constant 0 : index
    %c0_7 = arith.constant 0 : index
    %6 = vector.load %arg1[%c3, %c0_6, %c0_7] : memref<14x8x128xf32, #tpu.memory_space<vmem>>, vector<1x8x128xf32>
    %7 = vector.shape_cast %6 : vector<1x8x128xf32> to vector<8x128xf32>
    %c4 = arith.constant 4 : index
    %c0_8 = arith.constant 0 : index
    %c0_9 = arith.constant 0 : index
    %8 = vector.load %arg1[%c4, %c0_8, %c0_9] : memref<14x8x128xf32, #tpu.memory_space<vmem>>, vector<1x8x128xf32>
    %9 = vector.shape_cast %8 : vector<1x8x128xf32> to vector<8x128xf32>
    %c5 = arith.constant 5 : index
    %c0_10 = arith.constant 0 : index
    %c0_11 = arith.constant 0 : index
    %10 = vector.load %arg1[%c5, %c0_10, %c0_11] : memref<14x8x128xf32, #tpu.memory_space<vmem>>, vector<1x8x128xf32>
    %11 = vector.shape_cast %10 : vector<1x8x128xf32> to vector<8x128xf32>
    %c6 = arith.constant 6 : index
    %c0_12 = arith.constant 0 : index
    %c0_13 = arith.constant 0 : index
    %12 = vector.load %arg1[%c6, %c0_12, %c0_13] : memref<14x8x128xf32, #tpu.memory_space<vmem>>, vector<1x8x128xf32>
    %13 = vector.shape_cast %12 : vector<1x8x128xf32> to vector<8x128xf32>
    %c7 = arith.constant 7 : index
    %c0_14 = arith.constant 0 : index
    %c0_15 = arith.constant 0 : index
    %14 = vector.load %arg1[%c7, %c0_14, %c0_15] : memref<14x8x128xf32, #tpu.memory_space<vmem>>, vector<1x8x128xf32>
    %15 = vector.shape_cast %14 : vector<1x8x128xf32> to vector<8x128xf32>
    %c8 = arith.constant 8 : index
    %c0_16 = arith.constant 0 : index
    %c0_17 = arith.constant 0 : index
    %16 = vector.load %arg1[%c8, %c0_16, %c0_17] : memref<14x8x128xf32, #tpu.memory_space<vmem>>, vector<1x8x128xf32>
    %17 = vector.shape_cast %16 : vector<1x8x128xf32> to vector<8x128xf32>
    %c9 = arith.constant 9 : index
    %c0_18 = arith.constant 0 : index
    %c0_19 = arith.constant 0 : index
    %18 = vector.load %arg1[%c9, %c0_18, %c0_19] : memref<14x8x128xf32, #tpu.memory_space<vmem>>, vector<1x8x128xf32>
    %19 = vector.shape_cast %18 : vector<1x8x128xf32> to vector<8x128xf32>
    %c10 = arith.constant 10 : index
    %c0_20 = arith.constant 0 : index
    %c0_21 = arith.constant 0 : index
    %20 = vector.load %arg1[%c10, %c0_20, %c0_21] : memref<14x8x128xf32, #tpu.memory_space<vmem>>, vector<1x8x128xf32>
    %21 = vector.shape_cast %20 : vector<1x8x128xf32> to vector<8x128xf32>
    %c11 = arith.constant 11 : index
    %c0_22 = arith.constant 0 : index
    %c0_23 = arith.constant 0 : index
    %22 = vector.load %arg1[%c11, %c0_22, %c0_23] : memref<14x8x128xf32, #tpu.memory_space<vmem>>, vector<1x8x128xf32>
    %23 = vector.shape_cast %22 : vector<1x8x128xf32> to vector<8x128xf32>
    %c12 = arith.constant 12 : index
    %c0_24 = arith.constant 0 : index
    %c0_25 = arith.constant 0 : index
    %24 = vector.load %arg1[%c12, %c0_24, %c0_25] : memref<14x8x128xf32, #tpu.memory_space<vmem>>, vector<1x8x128xf32>
    %25 = vector.shape_cast %24 : vector<1x8x128xf32> to vector<8x128xf32>
    %c13 = arith.constant 13 : index
    %c0_26 = arith.constant 0 : index
    %c0_27 = arith.constant 0 : index
    %26 = vector.load %arg1[%c13, %c0_26, %c0_27] : memref<14x8x128xf32, #tpu.memory_space<vmem>>, vector<1x8x128xf32>
    %27 = vector.shape_cast %26 : vector<1x8x128xf32> to vector<8x128xf32>
    %c0_28 = arith.constant 0 : index
    %c0_29 = arith.constant 0 : index
    %c0_30 = arith.constant 0 : index
    %28 = vector.load %arg2[%c0_28, %c0_29, %c0_30] : memref<7x1x128xf32, #tpu.memory_space<vmem>>, vector<1x1x128xf32>
    %29 = vector.shape_cast %28 : vector<1x1x128xf32> to vector<1x128xf32>
    %c1_31 = arith.constant 1 : index
    %c0_32 = arith.constant 0 : index
    %c0_33 = arith.constant 0 : index
    %30 = vector.load %arg2[%c1_31, %c0_32, %c0_33] : memref<7x1x128xf32, #tpu.memory_space<vmem>>, vector<1x1x128xf32>
    %31 = vector.shape_cast %30 : vector<1x1x128xf32> to vector<1x128xf32>
    %c2_34 = arith.constant 2 : index
    %c0_35 = arith.constant 0 : index
    %c0_36 = arith.constant 0 : index
    %32 = vector.load %arg2[%c2_34, %c0_35, %c0_36] : memref<7x1x128xf32, #tpu.memory_space<vmem>>, vector<1x1x128xf32>
    %33 = vector.shape_cast %32 : vector<1x1x128xf32> to vector<1x128xf32>
    %c3_37 = arith.constant 3 : index
    %c0_38 = arith.constant 0 : index
    %c0_39 = arith.constant 0 : index
    %34 = vector.load %arg2[%c3_37, %c0_38, %c0_39] : memref<7x1x128xf32, #tpu.memory_space<vmem>>, vector<1x1x128xf32>
    %35 = vector.shape_cast %34 : vector<1x1x128xf32> to vector<1x128xf32>
    %c4_40 = arith.constant 4 : index
    %c0_41 = arith.constant 0 : index
    %c0_42 = arith.constant 0 : index
    %36 = vector.load %arg2[%c4_40, %c0_41, %c0_42] : memref<7x1x128xf32, #tpu.memory_space<vmem>>, vector<1x1x128xf32>
    %37 = vector.shape_cast %36 : vector<1x1x128xf32> to vector<1x128xf32>
    %c5_43 = arith.constant 5 : index
    %c0_44 = arith.constant 0 : index
    %c0_45 = arith.constant 0 : index
    %38 = vector.load %arg2[%c5_43, %c0_44, %c0_45] : memref<7x1x128xf32, #tpu.memory_space<vmem>>, vector<1x1x128xf32>
    %39 = vector.shape_cast %38 : vector<1x1x128xf32> to vector<1x128xf32>
    %c6_46 = arith.constant 6 : index
    %c0_47 = arith.constant 0 : index
    %c0_48 = arith.constant 0 : index
    %40 = vector.load %arg2[%c6_46, %c0_47, %c0_48] : memref<7x1x128xf32, #tpu.memory_space<vmem>>, vector<1x1x128xf32>
    %41 = vector.shape_cast %40 : vector<1x1x128xf32> to vector<1x128xf32>
    %42 = vector.broadcast %29 : vector<1x128xf32> to vector<8x128xf32>
    %43 = arith.subf %1, %42 : vector<8x128xf32>
    %44 = math.absf %43 : vector<8x128xf32>
    %45 = vector.broadcast %31 : vector<1x128xf32> to vector<8x128xf32>
    %46 = arith.subf %3, %45 : vector<8x128xf32>
    %47 = math.absf %46 : vector<8x128xf32>
    %48 = arith.addf %44, %47 : vector<8x128xf32>
    %49 = vector.broadcast %33 : vector<1x128xf32> to vector<8x128xf32>
    %50 = arith.subf %5, %49 : vector<8x128xf32>
    %51 = math.absf %50 : vector<8x128xf32>
    %52 = arith.addf %48, %51 : vector<8x128xf32>
    %53 = vector.broadcast %35 : vector<1x128xf32> to vector<8x128xf32>
    %54 = arith.subf %7, %53 : vector<8x128xf32>
    %55 = math.absf %54 : vector<8x128xf32>
    %56 = arith.addf %52, %55 : vector<8x128xf32>
    %57 = vector.broadcast %37 : vector<1x128xf32> to vector<8x128xf32>
    %58 = arith.subf %15, %57 : vector<8x128xf32>
    %59 = math.absf %58 : vector<8x128xf32>
    %60 = arith.addf %56, %59 : vector<8x128xf32>
    %61 = vector.broadcast %39 : vector<1x128xf32> to vector<8x128xf32>
    %62 = arith.subf %17, %61 : vector<8x128xf32>
    %63 = math.absf %62 : vector<8x128xf32>
    %64 = arith.addf %60, %63 : vector<8x128xf32>
    %65 = vector.broadcast %41 : vector<1x128xf32> to vector<8x128xf32>
    %66 = arith.subf %19, %65 : vector<8x128xf32>
    %67 = math.absf %66 : vector<8x128xf32>
    %68 = arith.addf %64, %67 : vector<8x128xf32>
    %69 = tpu.iota {dimensions = array<i32: 0>} : vector<8x128xi32>
    %cst = arith.constant dense<0x7F800000> : vector<128xf32>
    %70 = vector.multi_reduction <minimumf>, %68, %cst [0] : vector<8x128xf32> to vector<128xf32>
    %71 = vector.shape_cast %70 : vector<128xf32> to vector<1x128xf32>
    %72 = vector.broadcast %71 : vector<1x128xf32> to vector<8x128xf32>
    %73 = arith.cmpf oeq, %68, %72 : vector<8x128xf32>
    %c8_i32 = arith.constant 8 : i32
    %74 = vector.broadcast %c8_i32 : i32 to vector<8x128xi32>
    %75 = arith.select %73, %69, %74 : vector<8x128xi1>, vector<8x128xi32>
    %cst_49 = arith.constant dense<2147483647> : vector<128xi32>
    %76 = vector.multi_reduction <minsi>, %75, %cst_49 [0] : vector<8x128xi32> to vector<128xi32>
    %77 = vector.shape_cast %76 : vector<128xi32> to vector<1x128xi32>
    %78 = vector.broadcast %77 : vector<1x128xi32> to vector<8x128xi32>
    %79 = arith.cmpi eq, %69, %78 : vector<8x128xi32>
    %cst_50 = arith.constant 0.000000e+00 : f32
    %80 = vector.broadcast %cst_50 : f32 to vector<8x128xf32>
    %81 = arith.subf %80, %3 : vector<8x128xf32>
    %82 = vector.broadcast %29 : vector<1x128xf32> to vector<8x128xf32>
    %83 = arith.mulf %81, %82 : vector<8x128xf32>
    %84 = vector.broadcast %31 : vector<1x128xf32> to vector<8x128xf32>
    %85 = arith.mulf %1, %84 : vector<8x128xf32>
    %86 = arith.addf %83, %85 : vector<8x128xf32>
    %87 = vector.broadcast %33 : vector<1x128xf32> to vector<8x128xf32>
    %88 = arith.mulf %7, %87 : vector<8x128xf32>
    %89 = arith.addf %86, %88 : vector<8x128xf32>
    %90 = vector.broadcast %35 : vector<1x128xf32> to vector<8x128xf32>
    %91 = arith.mulf %5, %90 : vector<8x128xf32>
    %92 = arith.subf %89, %91 : vector<8x128xf32>
    %cst_51 = arith.constant 0.000000e+00 : f32
    %93 = vector.broadcast %cst_51 : f32 to vector<8x128xf32>
    %94 = arith.subf %93, %5 : vector<8x128xf32>
    %95 = vector.broadcast %29 : vector<1x128xf32> to vector<8x128xf32>
    %96 = arith.mulf %94, %95 : vector<8x128xf32>
    %97 = vector.broadcast %31 : vector<1x128xf32> to vector<8x128xf32>
    %98 = arith.mulf %7, %97 : vector<8x128xf32>
    %99 = arith.subf %96, %98 : vector<8x128xf32>
    %100 = vector.broadcast %33 : vector<1x128xf32> to vector<8x128xf32>
    %101 = arith.mulf %1, %100 : vector<8x128xf32>
    %102 = arith.addf %99, %101 : vector<8x128xf32>
    %103 = vector.broadcast %35 : vector<1x128xf32> to vector<8x128xf32>
    %104 = arith.mulf %3, %103 : vector<8x128xf32>
    %105 = arith.addf %102, %104 : vector<8x128xf32>
    %cst_52 = arith.constant 0.000000e+00 : f32
    %106 = vector.broadcast %cst_52 : f32 to vector<8x128xf32>
    %107 = arith.subf %106, %7 : vector<8x128xf32>
    %108 = vector.broadcast %29 : vector<1x128xf32> to vector<8x128xf32>
    %109 = arith.mulf %107, %108 : vector<8x128xf32>
    %110 = vector.broadcast %31 : vector<1x128xf32> to vector<8x128xf32>
    %111 = arith.mulf %5, %110 : vector<8x128xf32>
    %112 = arith.addf %109, %111 : vector<8x128xf32>
    %113 = vector.broadcast %33 : vector<1x128xf32> to vector<8x128xf32>
    %114 = arith.mulf %3, %113 : vector<8x128xf32>
    %115 = arith.subf %112, %114 : vector<8x128xf32>
    %116 = vector.broadcast %35 : vector<1x128xf32> to vector<8x128xf32>
    %117 = arith.mulf %1, %116 : vector<8x128xf32>
    %118 = arith.addf %115, %117 : vector<8x128xf32>
    %cst_53 = arith.constant 0.000000e+00 : f32
    %119 = vector.broadcast %cst_53 : f32 to vector<8x128xf32>
    %120 = arith.subf %119, %9 : vector<8x128xf32>
    %cst_54 = arith.constant 0.000000e+00 : f32
    %121 = vector.broadcast %cst_54 : f32 to vector<8x128xf32>
    %122 = arith.subf %121, %11 : vector<8x128xf32>
    %123 = arith.mulf %120, %122 : vector<8x128xf32>
    %cst_55 = arith.constant 0.000000e+00 : f32
    %124 = vector.broadcast %cst_55 : f32 to vector<8x128xf32>
    %125 = arith.subf %124, %13 : vector<8x128xf32>
    %126 = arith.mulf %123, %125 : vector<8x128xf32>
    %127 = math.log %126 : vector<8x128xf32>
    %cst_56 = arith.constant 5.000000e-01 : f32
    %128 = vector.broadcast %cst_56 : f32 to vector<8x128xf32>
    %129 = arith.mulf %128, %127 : vector<8x128xf32>
    %cst_57 = arith.constant 2.41024208 : f32
    %130 = vector.broadcast %cst_57 : f32 to vector<8x128xf32>
    %131 = arith.subf %130, %129 : vector<8x128xf32>
    %132 = arith.mulf %9, %92 : vector<8x128xf32>
    %133 = arith.mulf %132, %92 : vector<8x128xf32>
    %134 = arith.mulf %11, %105 : vector<8x128xf32>
    %135 = arith.mulf %134, %105 : vector<8x128xf32>
    %136 = arith.addf %133, %135 : vector<8x128xf32>
    %137 = arith.mulf %13, %118 : vector<8x128xf32>
    %138 = arith.mulf %137, %118 : vector<8x128xf32>
    %139 = arith.addf %136, %138 : vector<8x128xf32>
    %140 = arith.subf %139, %131 : vector<8x128xf32>
    %cst_58 = arith.constant 9.99999993E-9 : f32
    %141 = vector.broadcast %cst_58 : f32 to vector<8x128xf32>
    %142 = arith.addf %21, %141 : vector<8x128xf32>
    %cst_59 = arith.constant 9.99999993E-9 : f32
    %143 = vector.broadcast %cst_59 : f32 to vector<8x128xf32>
    %144 = arith.addf %23, %143 : vector<8x128xf32>
    %cst_60 = arith.constant 9.99999993E-9 : f32
    %145 = vector.broadcast %cst_60 : f32 to vector<8x128xf32>
    %146 = arith.addf %25, %145 : vector<8x128xf32>
    %147 = arith.mulf %142, %144 : vector<8x128xf32>
    %148 = arith.mulf %142, %146 : vector<8x128xf32>
    %149 = arith.mulf %144, %146 : vector<8x128xf32>
    %150 = arith.mulf %147, %146 : vector<8x128xf32>
    %151 = tpu.reciprocal %150 {approx = true} : vector<8x128xf32> -> vector<8x128xf32>
    %152 = arith.mulf %150, %151 : vector<8x128xf32>
    %cst_61 = arith.constant 2.000000e+00 : f32
    %153 = vector.broadcast %cst_61 : f32 to vector<8x128xf32>
    %154 = arith.subf %153, %152 : vector<8x128xf32>
    %155 = arith.mulf %151, %154 : vector<8x128xf32>
    %156 = vector.broadcast %37 : vector<1x128xf32> to vector<8x128xf32>
    %157 = arith.subf %156, %15 : vector<8x128xf32>
    %158 = arith.mulf %157, %157 : vector<8x128xf32>
    %159 = arith.mulf %158, %149 : vector<8x128xf32>
    %160 = vector.broadcast %39 : vector<1x128xf32> to vector<8x128xf32>
    %161 = arith.subf %160, %17 : vector<8x128xf32>
    %162 = arith.mulf %161, %161 : vector<8x128xf32>
    %163 = arith.mulf %162, %148 : vector<8x128xf32>
    %164 = arith.addf %159, %163 : vector<8x128xf32>
    %165 = vector.broadcast %41 : vector<1x128xf32> to vector<8x128xf32>
    %166 = arith.subf %165, %19 : vector<8x128xf32>
    %167 = arith.mulf %166, %166 : vector<8x128xf32>
    %168 = arith.mulf %167, %147 : vector<8x128xf32>
    %169 = arith.addf %164, %168 : vector<8x128xf32>
    %170 = arith.mulf %169, %155 : vector<8x128xf32>
    %cst_62 = arith.constant 5.51363134 : f32
    %171 = vector.broadcast %cst_62 : f32 to vector<8x128xf32>
    %172 = arith.addf %170, %171 : vector<8x128xf32>
    %173 = math.log %150 : vector<8x128xf32>
    %174 = arith.addf %172, %173 : vector<8x128xf32>
    %cst_63 = arith.constant -5.000000e-01 : f32
    %175 = vector.broadcast %cst_63 : f32 to vector<8x128xf32>
    %176 = arith.mulf %175, %174 : vector<8x128xf32>
    %177 = tpu.iota {dimensions = array<i32: 1>} : vector<1x128xi32>
    %c128_i32 = arith.constant 128 : i32
    %178 = arith.muli %arg0, %c128_i32 : i32
    %179 = vector.broadcast %178 : i32 to vector<1x128xi32>
    %180 = arith.addi %177, %179 : vector<1x128xi32>
    %c2_i32 = arith.constant 2 : i32
    %181 = vector.broadcast %c2_i32 : i32 to vector<1x128xi32>
    %182 = arith.cmpi slt, %180, %181 : vector<1x128xi32>
    %cst_64 = arith.constant dense<0xFF800000> : vector<128xf32>
    %183 = vector.multi_reduction <maximumf>, %27, %cst_64 [0] : vector<8x128xf32> to vector<128xf32>
    %184 = vector.shape_cast %183 : vector<128xf32> to vector<1x128xf32>
    %185 = vector.broadcast %184 : vector<1x128xf32> to vector<8x128xf32>
    %186 = arith.subf %27, %185 : vector<8x128xf32>
    %187 = math.exp %186 : vector<8x128xf32>
    %cst_65 = arith.constant dense<0.000000e+00> : vector<128xf32>
    %188 = vector.multi_reduction <add>, %187, %cst_65 [0] : vector<8x128xf32> to vector<128xf32>
    %189 = vector.shape_cast %188 : vector<128xf32> to vector<1x128xf32>
    %190 = math.log %189 : vector<1x128xf32>
    %191 = arith.addf %184, %190 : vector<1x128xf32>
    %cst_66 = arith.constant 0.000000e+00 : f32
    %192 = vector.broadcast %cst_66 : f32 to vector<8x128xf32>
    %193 = arith.select %79, %27, %192 : vector<8x128xi1>, vector<8x128xf32>
    %cst_67 = arith.constant dense<0.000000e+00> : vector<128xf32>
    %194 = vector.multi_reduction <add>, %193, %cst_67 [0] : vector<8x128xf32> to vector<128xf32>
    %195 = vector.shape_cast %194 : vector<128xf32> to vector<1x128xf32>
    %cst_68 = arith.constant 0.000000e+00 : f32
    %196 = vector.broadcast %cst_68 : f32 to vector<8x128xf32>
    %197 = arith.subf %196, %140 : vector<8x128xf32>
    %cst_69 = arith.constant dense<0.000000e+00> : vector<128xf32>
    %198 = vector.multi_reduction <add>, %197, %cst_69 [0] : vector<8x128xf32> to vector<128xf32>
    %199 = vector.shape_cast %198 : vector<128xf32> to vector<1x128xf32>
    %cst_70 = arith.constant 0.000000e+00 : f32
    %200 = vector.broadcast %cst_70 : f32 to vector<8x128xf32>
    %201 = arith.select %79, %197, %200 : vector<8x128xi1>, vector<8x128xf32>
    %cst_71 = arith.constant dense<0.000000e+00> : vector<128xf32>
    %202 = vector.multi_reduction <add>, %201, %cst_71 [0] : vector<8x128xf32> to vector<128xf32>
    %203 = vector.shape_cast %202 : vector<128xf32> to vector<1x128xf32>
    %cst_72 = arith.constant 0.824999988 : f32
    %204 = vector.broadcast %cst_72 : f32 to vector<1x128xf32>
    %205 = arith.mulf %204, %203 : vector<1x128xf32>
    %cst_73 = arith.constant 7.812500e-04 : f32
    %206 = vector.broadcast %cst_73 : f32 to vector<1x128xf32>
    %207 = arith.mulf %206, %199 : vector<1x128xf32>
    %208 = arith.addf %205, %207 : vector<1x128xf32>
    %cst_74 = arith.constant 0.000000e+00 : f32
    %209 = vector.broadcast %cst_74 : f32 to vector<1x128xf32>
    %210 = arith.select %182, %208, %209 : vector<1x128xi1>, vector<1x128xf32>
    %211 = arith.subf %191, %195 : vector<1x128xf32>
    %cst_75 = arith.constant 0.000000e+00 : f32
    %212 = vector.broadcast %cst_75 : f32 to vector<1x128xf32>
    %213 = arith.select %182, %211, %212 : vector<1x128xi1>, vector<1x128xf32>
    %cst_76 = arith.constant 0.000000e+00 : f32
    %214 = vector.broadcast %cst_76 : f32 to vector<8x128xf32>
    %215 = arith.subf %214, %176 : vector<8x128xf32>
    %cst_77 = arith.constant dense<0.000000e+00> : vector<128xf32>
    %216 = vector.multi_reduction <add>, %215, %cst_77 [0] : vector<8x128xf32> to vector<128xf32>
    %217 = vector.shape_cast %216 : vector<128xf32> to vector<1x128xf32>
    %cst_78 = arith.constant 0.000000e+00 : f32
    %218 = vector.broadcast %cst_78 : f32 to vector<8x128xf32>
    %219 = arith.select %79, %215, %218 : vector<8x128xi1>, vector<8x128xf32>
    %cst_79 = arith.constant dense<0.000000e+00> : vector<128xf32>
    %220 = vector.multi_reduction <add>, %219, %cst_79 [0] : vector<8x128xf32> to vector<128xf32>
    %221 = vector.shape_cast %220 : vector<128xf32> to vector<1x128xf32>
    %cst_80 = arith.constant 0.824999988 : f32
    %222 = vector.broadcast %cst_80 : f32 to vector<1x128xf32>
    %223 = arith.mulf %222, %221 : vector<1x128xf32>
    %cst_81 = arith.constant 7.812500e-04 : f32
    %224 = vector.broadcast %cst_81 : f32 to vector<1x128xf32>
    %225 = arith.mulf %224, %217 : vector<1x128xf32>
    %226 = arith.addf %223, %225 : vector<1x128xf32>
    %cst_82 = arith.constant 0.000000e+00 : f32
    %227 = vector.broadcast %cst_82 : f32 to vector<1x128xf32>
    %228 = arith.select %182, %226, %227 : vector<1x128xi1>, vector<1x128xf32>
    %229 = vector.shape_cast %210 : vector<1x128xf32> to vector<1x1x128xf32>
    %c0_83 = arith.constant 0 : index
    %c0_84 = arith.constant 0 : index
    %c0_85 = arith.constant 0 : index
    %230 = vector.load %arg3[%c0_83, %c0_84, %c0_85] : memref<1x8x128xf32, #tpu.memory_space<vmem>>, vector<1x1x128xf32>
    tpu.vector_store %arg3[%c0_83, %c0_84, %c0_85], %229 {strides = array<i32>} : memref<1x8x128xf32, #tpu.memory_space<vmem>>, vector<1x1x128xf32>,
    %231 = vector.shape_cast %213 : vector<1x128xf32> to vector<1x1x128xf32>
    %c0_86 = arith.constant 0 : index
    %c1_87 = arith.constant 1 : index
    %c0_88 = arith.constant 0 : index
    %232 = vector.load %arg3[%c0_86, %c1_87, %c0_88] : memref<1x8x128xf32, #tpu.memory_space<vmem>>, vector<1x1x128xf32>
    tpu.vector_store %arg3[%c0_86, %c1_87, %c0_88], %231 {strides = array<i32>} : memref<1x8x128xf32, #tpu.memory_space<vmem>>, vector<1x1x128xf32>,
    %233 = vector.shape_cast %228 : vector<1x128xf32> to vector<1x1x128xf32>
    %c0_89 = arith.constant 0 : index
    %c2_90 = arith.constant 2 : index
    %c0_91 = arith.constant 0 : index
    %234 = vector.load %arg3[%c0_89, %c2_90, %c0_91] : memref<1x8x128xf32, #tpu.memory_space<vmem>>, vector<1x1x128xf32>
    tpu.vector_store %arg3[%c0_89, %c2_90, %c0_91], %233 {strides = array<i32>} : memref<1x8x128xf32, #tpu.memory_space<vmem>>, vector<1x1x128xf32>,
    %cst_92 = arith.constant 0.000000e+00 : f32
    %235 = vector.broadcast %cst_92 : f32 to vector<1x5x128xf32>
    %c0_93 = arith.constant 0 : index
    %c3_94 = arith.constant 3 : index
    %c0_95 = arith.constant 0 : index
    %236 = vector.load %arg3[%c0_93, %c3_94, %c0_95] : memref<1x8x128xf32, #tpu.memory_space<vmem>>, vector<1x5x128xf32>
    tpu.vector_store %arg3[%c0_93, %c3_94, %c0_95], %235 {strides = array<i32>} : memref<1x8x128xf32, #tpu.memory_space<vmem>>, vector<1x5x128xf32>,
    return
  }
  func.func @transform_0(%arg0: i32) -> (i32, i32, i32) {
    %c0_i32 = arith.constant 0 : i32
    %c0_i32_0 = arith.constant 0 : i32
    %c0_i32_1 = arith.constant 0 : i32
    return %c0_i32, %c0_i32_0, %arg0 : i32, i32, i32
  }
  func.func @transform_1(%arg0: i32) -> (i32, i32, i32) {
    %c0_i32 = arith.constant 0 : i32
    %c0_i32_0 = arith.constant 0 : i32
    %c0_i32_1 = arith.constant 0 : i32
    return %c0_i32, %c0_i32_0, %arg0 : i32, i32, i32
  }
  func.func @transform_2(%arg0: i32) -> (i32, i32, i32) {
    %c0_i32 = arith.constant 0 : i32
    %c0_i32_0 = arith.constant 0 : i32
    %c0_i32_1 = arith.constant 0 : i32
    return %arg0, %c0_i32, %c0_i32_0 : i32, i32, i32
  }
}

</mosaic_0001>

<bundles_post_ra>
// kernel: tpu_custom_call.1
= control target key start
LH: loop header
LB: loop body
LE: loop exit
PB: predicated region body
PF: predicated region fallthrough
CT: control target
= control target key end

     0   :  { %7 = vsyncpa [#allocation3], 0  ;;  %s465_s0 = inlined_call_operand.hbm [shape: f32[14,8,128], index: 0, kind: input, shape index: {}]   ;;  %s466_s1 = inlined_call_operand.hbm [shape: f32[7,1,128], index: 1, kind: input, shape index: {}]   ;;  %s467_s2 = inlined_call_operand.hbm [shape: f32[1,8,128], index: 2, kind: output, shape index: {}]  }
   0x1   :  { %8 = vsyncpa [#allocation6], 0 }
   0x2   :  { %9 = vsyncpa [#allocation4], 0  ;;  %s14_s11 = sshll.u32 %s465_s0, 4  ;;  %s409_s12 = smov [#allocation2]   ;;  %s15_s11 = int_to_ptr.hbm [resolvable:$true] %s14_s11 }
   0x3   :  { %s16_s13 = sshll.u32 %s409_s12, 4  ;;  %s27_s16 = sshll.u32 %s466_s1, 4  ;;  %s17_s13 = int_to_ptr.vmem [resolvable:$true] %s16_s13  ;;  %s28_s16 = int_to_ptr.hbm [resolvable:$true] %s27_s16 }
   0x4   :  { %s410_s17 = smov 128   ;;  %s411_s18 = smov 8  }
   0x5   :  { %22 = dma.hbm_to_vmem [thread:$0]  %s15_s11, 1792, %s17_s13, [#allocation3], %s410_s17, %s410_s17, %s411_s18  }
   0x6   :  { %s412_s19 = smov [#allocation5]   ;;  %s413_s21 = smov 16  }
   0x7   :  { %s29_s20 = sshll.u32 %s412_s19, 4  ;;  %s414_s22 = smov 1   ;;  %s30_s20 = int_to_ptr.vmem [resolvable:$true] %s29_s20 }
   0x8   :  { %35 = dma.hbm_to_vmem [thread:$0]  %s28_s16, 112, %s30_s20, [#allocation6], %s413_s21, %s413_s21, %s414_s22  }
   0x9   :  { %403 = dma.done.wait [#allocation3], 1792  }
   0xa   :  { %404 = vsyncadd [#allocation3], 4294965504 }
   0xb   :  { %405 = dma.done.wait [#allocation6], 112  }
   0xc   :  { %406 = vsyncadd [#allocation6], 4294967184  ;;  %v46_v0 = vld [vmem:[#allocation2 + $0x8] sm:$0xff]  ;;  %v48_v1 = vld [vmem:[#allocation2 + $0x10] sm:$0xff]  ;;  %s416_s0 = smov [#allocation7]   ;;  %s295_s25 = sshll.u32 %s467_s2, 4  ;;  %s296_s25 = int_to_ptr.hbm [resolvable:$true] %s295_s25 }
   0xd   :  { %v438_v2 = vld [vmem:[#allocation2 + $0x20] sm:$0xff]  ;;  %v440_v3 = vld [vmem:[#allocation2 + $0x28] sm:$0xff]  ;;  %v50_v5 = vld [vmem:[#allocation2 + $0x18] sm:$0xff]  ;;  %v145_v7 = vsub.f32 0.0, %v46_v0  ;;  %v153_v8 = vsub.f32 0.0, %v48_v1  ;;  %s293_s1 = sshll.u32 %s416_s0, 4  ;;  %s294_s1 = int_to_ptr.vmem [resolvable:$true] %s293_s1 }
   0xe   :  { %v44_v4 = vld [vmem:[#allocation2] sm:$0xff]  ;;  %v442_v6 = vld [vmem:[#allocation2 + $0x30] sm:$0xff]  ;;  %v169_v9 = vsub.f32 0.0, %v438_v2  ;;  %v170_v10 = vsub.f32 0.0, %v440_v3  ;;  %v161_v11 = vsub.f32 0.0, %v50_v5  ;;  %v58_v13 = vld [vmem:[#allocation2 + $0x38] sm:$0xff] }
   0xf   :  { %v172_v12 = vsub.f32 0.0, %v442_v6  ;;  %v314_v14 = vld [vmem:[#allocation5] ss:$0 sm:$0xff]  ;;  %v315_v16 = vld [vmem:[#allocation5 + $0x1] ss:$0 sm:$0xff]  ;;  %v60_v24 = vld [vmem:[#allocation2 + $0x40] sm:$0xff] }
  0x10   :  { %v171_v15 = vmul.f32 %v170_v10, %v169_v9  ;;  %v316_v17 = vld [vmem:[#allocation5 + $0x2] ss:$0 sm:$0xff]  ;;  %v317_v18 = vld [vmem:[#allocation5 + $0x3] ss:$0 sm:$0xff]  ;;  %v87_v19 = vsub.f32 %v44_v4, %v314_v14  ;;  %v318_v20 = vld [vmem:[#allocation5 + $0x4] ss:$0 sm:$0xff]  ;;  %v146_v23 = vmul.f32 %v314_v14, %v145_v7  ;;  %v92_v26 = vsub.f32 %v46_v0, %v315_v16 }
  0x11   :  { %v319_v21 = vld [vmem:[#allocation5 + $0x5] ss:$0 sm:$0xff]  ;;  %v320_v22 = vld [vmem:[#allocation5 + $0x6] ss:$0 sm:$0xff]  ;;  %v62_v25 = vld [vmem:[#allocation2 + $0x48] sm:$0xff]  ;;  %v98_v27 = vsub.f32 %v48_v1, %v316_v17  ;;  %v104_v28 = vsub.f32 %v50_v5, %v317_v18  ;;  %v147_v29 = vmul.f32 %v315_v16, %v44_v4  ;;  %v110_v31 = vsub.f32 %v58_v13, %v318_v20 }
  0x12   :  { %v88_v30 = vand.u32 2147483647, %v87_v19  ;;  %v154_v32 = vmul.f32 %v314_v14, %v153_v8  ;;  %v173_v33 = vmul.f32 %v172_v12, %v171_v15  ;;  %v93_v34 = vand.u32 2147483647, %v92_v26  ;;  %v447_v50 = vld [vmem:[#allocation2 + $0x68] sm:$0xff]  ;;  %v64_v62 = vld [vmem:[#allocation2 + $0x50] sm:$0xff] }
  0x13   :  { %v99_v35 = vand.u32 2147483647, %v98_v27  ;;  %v148_v36 = vadd.f32 %v147_v29, %v146_v23  ;;  %v162_v37 = vmul.f32 %v314_v14, %v161_v11  ;;  %v105_v38 = vand.u32 2147483647, %v104_v28  ;;  %v66_v7 = vld [vmem:[#allocation2 + $0x58] sm:$0xff]  ;;  %v68_v11 = vld [vmem:[#allocation2 + $0x60] sm:$0xff] }
  0x14   :  { %v116_v39 = vsub.f32 %v60_v24, %v319_v21  ;;  %v122_v40 = vsub.f32 %v62_v25, %v320_v22  ;;  %v149_v41 = vmul.f32 %v316_v17, %v50_v5  ;;  %v94_v42 = vadd.f32 %v93_v34, %v88_v30 }
  0x15   :  { %v151_v43 = vmul.f32 %v317_v18, %v48_v1  ;;  %v155_v44 = vmul.f32 %v315_v16, %v50_v5  ;;  %v157_v45 = vmul.f32 %v316_v17, %v44_v4  ;;  %v111_v46 = vand.u32 2147483647, %v110_v31 }
  0x16   :  { %v150_v47 = vadd.f32 %v149_v41, %v148_v36  ;;  %v163_v48 = vmul.f32 %v315_v16, %v48_v1  ;;  %v165_v49 = vmul.f32 %v316_v17, %v46_v0  ;;  %v100_v51 = vadd.f32 %v99_v35, %v94_v42 }
  0x17   :  { %v156_v52 = vsub.f32 %v154_v32, %v155_v44  ;;  %v159_v53 = vmul.f32 %v317_v18, %v46_v0  ;;  %321 = vlog2.f32 %v173_v33  ;;  %v167_v56 = vmul.f32 %v317_v18, %v44_v4 }
  0x18   :  { %v152_v54 = vsub.f32 %v150_v47, %v151_v43  ;;  %v164_v55 = vadd.f32 %v163_v48, %v162_v37  ;;  %v198_v57 = vsub.f32 %v318_v20, %v58_v13  ;;  %v106_v58 = vadd.f32 %v105_v38, %v100_v51 }
  0x19   :  { %v117_v59 = vand.u32 2147483647, %v116_v39  ;;  %v158_v60 = vadd.f32 %v157_v45, %v156_v52  ;;  %v221_v61 = vrot.slane %v447_v50, 4  ;;  %v123_v63 = vand.u32 2147483647, %v122_v40 }
  0x1a   :  { %v166_v5 = vsub.f32 %v164_v55, %v165_v49  ;;  %v178_v1 = vmul.f32 %v152_v54, %v438_v2  ;;  %v112_v8 = vadd.f32 %v111_v46, %v106_v58  ;;  %v201_v10 = vsub.f32 %v319_v21, %v60_v24 }
  0x1b   :  { %v160_v9 = vadd.f32 %v159_v53, %v158_v60  ;;  %v205_v0 = vsub.f32 %v320_v22, %v62_v25  ;;  %v199_v14 = vmul.f32 %v198_v57, %v198_v57  ;;  %v222_v4 = vmax.f32 %v447_v50, %v221_v61 }
  0x1c   :  { %v168_v12 = vadd.f32 %v167_v56, %v166_v5  ;;  %v187_v13 = vadd.f32 1e-08, %v64_v62  ;;  %v118_v16 = vadd.f32 %v117_v59, %v112_v8  ;;  %v179_v17 = vmul.f32 %v178_v1, %v152_v54 }
  0x1d   :  { %v322_v15 = vpop.eup %321  ;;  %v180_v18 = vmul.f32 %v160_v9, %v440_v3  ;;  %v188_v19 = vadd.f32 1e-08, %v66_v7  ;;  %v223_v23 = vrot.slane %v222_v4, 2  ;;  %v189_v26 = vadd.f32 1e-08, %v68_v11 }
  0x1e   :  { %v175_v20 = vmul.f32 0.6931472, %v322_v15  ;;  %v183_v2 = vmul.f32 %v168_v12, %v442_v6  ;;  %v124_v27 = vadd.f32 %v123_v63, %v118_v16  ;;  %v202_v22 = vmul.f32 %v201_v10, %v201_v10 }
  0x1f   :  { %v181_v21 = vmul.f32 %v180_v18, %v160_v9  ;;  %v190_v24 = vmul.f32 %v188_v19, %v187_v13  ;;  %v224_v29 = vmax.f32 %v222_v4, %v223_v23  ;;  %v191_v30 = vmul.f32 %v189_v26, %v187_v13 }
  0x20   :  { %v176_v25 = vmul.f32 0.5, %v175_v20  ;;  %v184_v28 = vmul.f32 %v183_v2, %v168_v12  ;;  %v127_v31 = vrot.slane %v124_v27, 4  ;;  %v192_v33 = vmul.f32 %v189_v26, %v188_v19 }
  0x21   :  { %v182_v32 = vadd.f32 %v181_v21, %v179_v17  ;;  %v193_v34 = vmul.f32 %v190_v24, %v189_v26  ;;  %v225_v3 = vrot.slane %v224_v29, 1  ;;  %v206_v6 = vmul.f32 %v205_v0, %v205_v0 }
  0x22   :  { %v177_v35 = vsub.f32 2.410242, %v176_v25  ;;  %v128_v36 = vmin.f32 %v124_v27, %v127_v31  ;;  %v200_v39 = vmul.f32 %v199_v14, %v192_v33  ;;  %v203_v40 = vmul.f32 %v202_v22, %v191_v30 }
  0x23   :  { %v185_v37 = vadd.f32 %v184_v28, %v182_v32  ;;  %323 = vrcp.f32 %v193_v34  ;;  %v454_v38 = vmax.f32 %v224_v29, %v225_v3  ;;  %v125_v42 = vlaneseq }
  0x24   :  { %v129_v41 = vrot.slane %v128_v36, 2  ;;  %325 = vlog2.f32 %v193_v34  ;;  %v204_v47 = vadd.f32 %v203_v40, %v200_v39  ;;  %v207_v48 = vmul.f32 %v206_v6, %v190_v24 }
  0x25   :  { %v186_v43 = vsub.f32 %v185_v37, %v177_v35  ;;  %v227_v44 = vsub.f32 %v447_v50, %v454_v38  ;;  %v126_v52 = vshrl.u32 %v125_v42, 7  ;;  %v415_v63 = vmov 0.0  }
  0x26   :  { %v130_v45 = vmin.f32 %v128_v36, %v129_v41  ;;  %v208_v57 = vadd.f32 %v207_v48, %v204_v47  ;;  %287 = vst [vmem:[#allocation7 + $0x3] sm:$0x1f] %v415_v63 }
  0x27   :  { %v228_v46 = vmul.f32 1.442695, %v227_v44  ;;  %v246_v53 = vsub.f32 0.0, %v186_v43 }
  0x28   :  { %v131_v51 = vrot.slane %v130_v45, 1 }
  0x29   :  { %v324_v49 = vpop.eup %323  ;;  %327 = vpow2.f32 %v228_v46  ;;  %v247_v60 = vrot.slane %v246_v53, 4 }
  0x2a   :  { %v195_v54 = vmul.f32 %v324_v49, %v193_v34  ;;  %v132_v55 = vmin.f32 %v130_v45, %v131_v51  ;;  %v326_v58 = vpop.eup %325  ;;  %v216_v45 = vand.u32 127, %v125_v42 }
  0x2b   :  { %v212_v7 = vmul.f32 0.6931472, %v326_v58  ;;  %v248_v10 = vadd.f32 %v247_v60, %v246_v53 }
  0x2c   :  { %v196_v56 = vsub.f32 2.0, %v195_v54  ;;  %vm133_vm0 = vcmp.eq.f32.partialorder %v124_v27, %v132_v55  ;;  %vm220_vm5 = vcmp.lt.s32.totalorder %v216_v45, 2 }
  0x2d   :  { %v134_v59 = vsel %vm133_vm0, %v126_v52, 8  ;;  %v249_v15 = vrot.slane %v248_v10, 2 }
  0x2e   :  { %v197_v61 = vmul.f32 %v324_v49, %v196_v56  ;;  %v135_v62 = vrot.slane %v134_v59, 4 }
  0x2f   :  { %v328_v5 = vpop.eup %327  ;;  %v250_v23 = vadd.f32 %v249_v15, %v248_v10 }
  0x30   :  { %v209_v1 = vmul.f32 %v208_v57, %v197_v61  ;;  %vm136_vm1 = vcmp.lt.s32.totalorder %v134_v59, %v135_v62  ;;  %v230_v8 = vrot.slane %v328_v5, 4 }
  0x31   :  { %v137_v9 = vsel %vm136_vm1, %v134_v59, %v135_v62  ;;  %v251_v31 = vrot.slane %v250_v23, 1 }
  0x32   :  { %v210_v0 = vadd.f32 5.5136313, %v209_v1  ;;  %v138_v11 = vrot.slane %v137_v9, 2  ;;  %v231_v12 = vadd.f32 %v328_v5, %v230_v8 }
  0x33   :  { %v252_v39 = vadd.f32 %v251_v31, %v250_v23 }
  0x34   :  { %v213_v14 = vadd.f32 %v212_v7, %v210_v0  ;;  %vm139_vm2 = vcmp.lt.s32.totalorder %v137_v9, %v138_v11  ;;  %v232_v4 = vrot.slane %v231_v12, 2 }
  0x35   :  { %v140_v13 = vsel %vm139_vm2, %v137_v9, %v138_v11 }
  0x36   :  { %v214_v16 = vmul.f32 -0.5, %v213_v14  ;;  %v141_v17 = vrot.slane %v140_v13, 1  ;;  %v233_v18 = vadd.f32 %v232_v4, %v231_v12 }
  0x38   :  { %v266_v19 = vsub.f32 0.0, %v214_v16  ;;  %vm142_vm3 = vcmp.lt.s32.totalorder %v140_v13, %v141_v17  ;;  %v234_v20 = vrot.slane %v233_v18, 1 }
  0x39   :  { %v143_v2 = vsel %vm142_vm3, %v140_v13, %v141_v17 }
  0x3a   :  { %v267_v26 = vrot.slane %v266_v19, 4  ;;  %vm144_vm4 = vcmp.eq.s32.totalorder %v126_v52, %v143_v2  ;;  %v235_v27 = vadd.f32 %v234_v20, %v233_v18  ;;  %v261_v52 = vmul.f32 0.00078125, %v252_v39 }
  0x3b   :  { %v253_v21 = vsel %vm144_vm4, %v246_v53, 0.0  ;;  %v239_v22 = vsel %vm144_vm4, %v447_v50, 0.0  ;;  %v273_v25 = vsel %vm144_vm4, %v266_v19, 0.0 }
  0x3c   :  { %v268_v24 = vadd.f32 %v267_v26, %v266_v19  ;;  %v254_v28 = vrot.slane %v253_v21, 4  ;;  %329 = vlog2.f32 %v235_v27  ;;  %v240_v29 = vrot.slane %v239_v22, 4 }
  0x3d   :  { %v274_v30 = vrot.slane %v273_v25, 4 }
  0x3e   :  { %v269_v32 = vrot.slane %v268_v24, 2  ;;  %v255_v33 = vadd.f32 %v254_v28, %v253_v21  ;;  %v241_v34 = vadd.f32 %v240_v29, %v239_v22 }
  0x3f   :  { %v275_v35 = vadd.f32 %v274_v30, %v273_v25 }
  0x40   :  { %v270_v3 = vadd.f32 %v269_v32, %v268_v24  ;;  %v256_v36 = vrot.slane %v255_v33, 2  ;;  %v242_v37 = vrot.slane %v241_v34, 2 }
  0x41   :  { %v276_v6 = vrot.slane %v275_v35, 2 }
  0x42   :  { %v271_v40 = vrot.slane %v270_v3, 1  ;;  %v330_v41 = vpop.eup %329  ;;  %v257_v43 = vadd.f32 %v256_v36, %v255_v33  ;;  %v243_v50 = vadd.f32 %v242_v37, %v241_v34 }
  0x43   :  { %v277_v44 = vadd.f32 %v276_v6, %v275_v35  ;;  %v237_v46 = vmul.f32 0.6931472, %v330_v41 }
  0x44   :  { %v272_v47 = vadd.f32 %v271_v40, %v270_v3  ;;  %v258_v48 = vrot.slane %v257_v43, 1  ;;  %v244_v49 = vrot.slane %v243_v50, 1 }
  0x45   :  { %v278_v51 = vrot.slane %v277_v44, 1  ;;  %v238_v53 = vadd.f32 %v237_v46, %v454_v38 }
  0x46   :  { %v259_v54 = vadd.f32 %v258_v48, %v257_v43  ;;  %v245_v55 = vadd.f32 %v244_v49, %v243_v50  ;;  %v281_v57 = vmul.f32 0.00078125, %v272_v47 }
  0x47   :  { %v279_v56 = vadd.f32 %v278_v51, %v277_v44 }
  0x48   :  { %v260_v58 = vmul.f32 0.825, %v259_v54  ;;  %v264_v59 = vsub.f32 %v238_v53, %v245_v55 }
  0x49   :  { %v280_v60 = vmul.f32 0.825, %v279_v56 }
  0x4a   :  { %v262_v42 = vadd.f32 %v261_v52, %v260_v58  ;;  %v265_v61 = vsel %vm220_vm5, %v264_v59, 0.0 }
  0x4b   :  { %v282_v62 = vadd.f32 %v281_v57, %v280_v60  ;;  %285 = vst [vmem:[#allocation7 + $0x1] sm:$0x1] %v265_v61 }
  0x4c   :  { %v263_v63 = vsel %vm220_vm5, %v262_v42, 0.0 }
  0x4d   :  { %v283_v38 = vsel %vm220_vm5, %v282_v62, 0.0  ;;  %284 = vst [vmem:[#allocation7] sm:$0x1] %v263_v63 }
  0x4e   :  { %286 = vst [vmem:[#allocation7 + $0x2] sm:$0x1] %v283_v38 }
  0x4f   :  { %298 = dma.vmem_to_hbm [thread:$0]  %s294_s1, 128, %s296_s25, [#allocation4]  }
  0x50   :  { %407 = dma.done.wait [#allocation4], 128  }
  0x51   :  { %408 = vsyncadd [#allocation4], 4294967168 }
  0x52   :  { %303 = vsyncpa [#allocation3], 1 }
  0x53   :  { %304 = vsyncpa [#allocation6], 1 }
  0x54   :  { %305 = vsyncpa [#allocation4], 1 }

</bundles_post_ra>
